<compile_context>
chip_gen: v6e
topology: v6e:2x2x1
jax: 0.10.0
libtpu: 0.0.40
codegen_flags: <defaults>
</compile_context>

<pallas_src>
import jax
import jax.numpy as jnp
from jax.experimental import pallas as pl
from jax.experimental.pallas import tpu as pltpu


def _round_up(n: int, m: int) -> int:
    return ((n + m - 1) // m) * m


# --------------------------------------------------------------------------- #
# kernel
# --------------------------------------------------------------------------- #
def _rank1_vae_kernel(
    x_ref, eps_ref,
    w_enc_ref, b_enc_ref,
    w_heads_ref, b_heads_ref,
    w_dec_ref, b_dec_ref,
    out_ref,
):
    E = eps_ref.shape[-1]

    x = x_ref[...]        # [TM, D]  f32
    eps = eps_ref[...]    # [TM, E]  f32

    # encoder: Linear + ReLU
    h = jnp.dot(x, w_enc_ref[...], preferred_element_type=jnp.float32) + b_enc_ref[...]
    h = jnp.maximum(h, 0.0)                                    # [TM, E]

    # fused mean|log_var heads, already laid out in the W-wide output slab
    # (columns [0:E]=mean, [E:2E]=log_var, rest zero)
    heads = (jnp.dot(h, w_heads_ref[...], preferred_element_type=jnp.float32)
             + b_heads_ref[...])                               # [TM, W]
    mean = heads[:, :E]
    log_var = heads[:, E:2 * E]

    # reparameterize (exactly as in the torch module: log_var * eps + mean)
    z = log_var * eps + mean                                   # [TM, E]

    # decoder, laid out in columns [2E:2E+D] of the same W-wide slab (rest zero)
    xhat = (jnp.dot(z, w_dec_ref[...], preferred_element_type=jnp.float32)
            + b_dec_ref[...])                                  # [TM, W]

    # single full-width (128-lane-dense) store: [mean | log_var | x_hat | 0pad]
    out_ref[...] = (heads + xhat).astype(out_ref.dtype)


# --------------------------------------------------------------------------- #
# wrapper
# --------------------------------------------------------------------------- #
def rank1_vae_forward_packed(x, eps, packed, *, tm_target=2048):
    """Run Rank1VAE forward; returns the packed slab [B, W] with columns
    [0:E]=mean, [E:2E]=log_var, [2E:2E+D]=x_hat (rest zero-padding).

    x:      [B, rank1_dim]      float32
    eps:    [B, embedding_size] float32 standard-normal noise
    packed: dict from pack_params() (pre-padded, kernel-ready weights).
    """
    B, D = x.shape
    E = eps.shape[1]
    W = packed["w_heads"].shape[1]

    # Row tile: multiple of 8, as large as tm_target, but capped so small
    # batches still get >=2 grid steps (megacore sharding on v7x).
    tm = max(8, min(tm_target, _round_up(pl.cdiv(B, 2), 8)))
    grid = (pl.cdiv(B, tm),)

    def row_spec(width):
        return pl.BlockSpec((tm, width), lambda i: (i, 0))

    def resident_spec(shape):
        # constant index_map -> fetched once, stays VMEM-resident across the grid
        return pl.BlockSpec(shape, lambda i: (0, 0))

    in_specs = [
        row_spec(D), row_spec(E),
        resident_spec(packed["w_enc"].shape), resident_spec(packed["b_enc"].shape),
        resident_spec(packed["w_heads"].shape), resident_spec(packed["b_heads"].shape),
        resident_spec(packed["w_dec"].shape), resident_spec(packed["b_dec"].shape),
    ]
    out_specs = row_spec(W)
    out_shape = jax.ShapeDtypeStruct((B, W), jnp.float32)

    flops = 2 * B * E * (D + 2 * W)
    bytes_accessed = 4 * (B * (D + E + W) + D * E + E + 2 * E * W + 2 * W)

    slab = pl.pallas_call(
        _rank1_vae_kernel,
        out_shape=out_shape,
        grid=grid,
        in_specs=in_specs,
        out_specs=out_specs,
        compiler_params=pltpu.CompilerParams(
            dimension_semantics=("parallel",),      # both TCs on v7x
            vmem_limit_bytes=32 * 1024 * 1024,      # plenty at tm<=2048, fits v7x
        ),
        cost_estimate=pl.CostEstimate(
            flops=flops, transcendentals=0, bytes_accessed=bytes_accessed),
    )(
        x, eps,
        packed["w_enc"], packed["b_enc"],
        packed["w_heads"], packed["b_heads"],
        packed["w_dec"], packed["b_dec"],
    )
    return slab


def rank1_vae_forward(x, eps, packed, *, tm_target=2048):
    """Torch-shaped API: returns (x_hat, mean, log_var). If the consumer can
    read the packed slab directly, prefer rank1_vae_forward_packed (avoids the
    compact post-slice copies)."""
    D = x.shape[1]
    E = eps.shape[1]
    slab = rank1_vae_forward_packed(x, eps, packed, tm_target=tm_target)
    mean = slab[:, :E]
    log_var = slab[:, E:2 * E]
    x_hat = slab[:, 2 * E:2 * E + D]
    return x_hat, mean, log_var


# --------------------------------------------------------------------------- #
# params
# --------------------------------------------------------------------------- #
def init_params(key, rank1_dim, embedding_size):
    """Deterministic init mimicking nn.Linear shapes; weights stored [in, out]."""
    ks = jax.random.split(key, 8)

    def linear(kw, kb, fan_in, fan_out):
        bound = 1.0 / jnp.sqrt(fan_in)
        w = jax.random.uniform(kw, (fan_in, fan_out), jnp.float32, -bound, bound)
        b = jax.random.uniform(kb, (1, fan_out), jnp.float32, -bound, bound)
        return w, b

    w_enc, b_enc = linear(ks[0], ks[1], rank1_dim, embedding_size)
    w_mean, b_mean = linear(ks[2], ks[3], embedding_size, embedding_size)
    w_lv, b_lv = linear(ks[4], ks[5], embedding_size, embedding_size)
    w_dec, b_dec = linear(ks[6], ks[7], embedding_size, rank1_dim)
    return dict(
        w_enc=w_enc, b_enc=b_enc,
        w_mean=w_mean, b_mean=b_mean,
        w_lv=w_lv, b_lv=b_lv,
        w_dec=w_dec, b_dec=b_dec,
    )


def pack_params(params):
    """One-time packing/padding of the weights into the kernel's layout.
    Slab layout (width W = round128(2E + D)):
      cols [0:E]       mean head
      cols [E:2E]      log_var head
      cols [2E:2E+D]   decoder
      cols [2E+D:W]    zero padding
    """
    w_enc = params["w_enc"]
    D, E = w_enc.shape
    W = _round_up(2 * E + D, 128)

    w_heads = (jnp.zeros((E, W), jnp.float32)
               .at[:, :E].set(params["w_mean"])
               .at[:, E:2 * E].set(params["w_lv"]))
    b_heads = (jnp.zeros((1, W), jnp.float32)
               .at[:, :E].set(params["b_mean"][0])
               .at[:, E:2 * E].set(params["b_lv"][0]))
    w_dec = jnp.zeros((E, W), jnp.float32).at[:, 2 * E:2 * E + D].set(params["w_dec"])
    b_dec = jnp.zeros((1, W), jnp.float32).at[:, 2 * E:2 * E + D].set(params["b_dec"][0])

    return dict(
        w_enc=w_enc, b_enc=params["b_enc"],
        w_heads=w_heads, b_heads=b_heads,
        w_dec=w_dec, b_dec=b_dec,
    )


def _reference_forward(x, eps, p):
    h = jnp.maximum(x @ p["w_enc"] + p["b_enc"], 0.0)
    mean = h @ p["w_mean"] + p["b_mean"]
    log_var = h @ p["w_lv"] + p["b_lv"]
    z = log_var * eps + mean
    return z @ p["w_dec"] + p["b_dec"], mean, log_var


# TODO(synk): the torch module's training-mode `self.encodings` stash is host-side
# mutable state, not part of the forward compute, so it is not reproduced here.

if __name__ == "__main__":
    key = jax.random.PRNGKey(0)
    k_param, k_x, k_eps = jax.random.split(key, 3)

    batch = 8
    rank1_dim = 16
    embedding_size = 32

    params = init_params(k_param, rank1_dim, embedding_size)
    packed = pack_params(params)                       # one-time packing
    x = jax.random.normal(k_x, (batch, rank1_dim), jnp.float32)
    eps = jax.random.normal(k_eps, (batch, embedding_size), jnp.float32)

    x_hat, mean, log_var = rank1_vae_forward(x, eps, packed)
    jax.block_until_ready((x_hat, mean, log_var))

    # sanity check against a pure-JAX reference
    ref_xhat, ref_mean, ref_lv = _reference_forward(x, eps, params)
    assert jnp.allclose(x_hat, ref_xhat, atol=1e-4, rtol=1e-4)
    assert jnp.allclose(mean, ref_mean, atol=1e-4, rtol=1e-4)
    assert jnp.allclose(log_var, ref_lv, atol=1e-4, rtol=1e-4)

    print("KERNEL_OK")
</pallas_src>

<mosaic_0001>
module attributes {stable_mosaic.version = 11 : i64} {
  func.func @_rank1_vae_kernel(%arg0: i32, %arg1: memref<8x16xf32, #tpu.memory_space<vmem>>, %arg2: memref<8x32xf32, #tpu.memory_space<vmem>>, %arg3: memref<16x32xf32, #tpu.memory_space<vmem>>, %arg4: memref<1x32xf32, #tpu.memory_space<vmem>>, %arg5: memref<32x128xf32, #tpu.memory_space<vmem>>, %arg6: memref<1x128xf32, #tpu.memory_space<vmem>>, %arg7: memref<32x128xf32, #tpu.memory_space<vmem>>, %arg8: memref<1x128xf32, #tpu.memory_space<vmem>>, %arg9: memref<8x128xf32, #tpu.memory_space<vmem>>) attributes {dimension_semantics = [#tpu.dimension_semantics<parallel>], iteration_bounds = array<i64: 1>, scalar_prefetch = 0 : i64, scratch_operands = 0 : i64, tpu.core_type = #tpu.core_type<tc>, window_params = [{transform_indices = @transform_0, window_bounds = array<i64: 8, 16>}, {transform_indices = @transform_1, window_bounds = array<i64: 8, 32>}, {pipeline_mode = #tpu.pipeline_mode<synchronous>, transform_indices = @transform_2, window_bounds = array<i64: 16, 32>}, {pipeline_mode = #tpu.pipeline_mode<synchronous>, transform_indices = @transform_3, window_bounds = array<i64: 1, 32>}, {pipeline_mode = #tpu.pipeline_mode<synchronous>, transform_indices = @transform_4, window_bounds = array<i64: 32, 128>}, {pipeline_mode = #tpu.pipeline_mode<synchronous>, transform_indices = @transform_5, window_bounds = array<i64: 1, 128>}, {pipeline_mode = #tpu.pipeline_mode<synchronous>, transform_indices = @transform_6, window_bounds = array<i64: 32, 128>}, {pipeline_mode = #tpu.pipeline_mode<synchronous>, transform_indices = @transform_7, window_bounds = array<i64: 1, 128>}, {transform_indices = @transform_8, window_bounds = array<i64: 8, 128>}]} {
    %c0 = arith.constant 0 : index
    %c0_0 = arith.constant 0 : index
    %0 = vector.load %arg1[%c0, %c0_0] : memref<8x16xf32, #tpu.memory_space<vmem>>, vector<8x16xf32>
    %c0_1 = arith.constant 0 : index
    %c0_2 = arith.constant 0 : index
    %1 = vector.load %arg2[%c0_1, %c0_2] : memref<8x32xf32, #tpu.memory_space<vmem>>, vector<8x32xf32>
    %c0_3 = arith.constant 0 : index
    %c0_4 = arith.constant 0 : index
    %2 = vector.load %arg3[%c0_3, %c0_4] : memref<16x32xf32, #tpu.memory_space<vmem>>, vector<16x32xf32>
    %cst = arith.constant dense<0.000000e+00> : vector<8x32xf32>
    %3 = tpu.matmul %0, %2, %cst {dimension_numbers = #tpu.dot_dimension_numbers<[1], [0], [0], [1], [0, 0, 1, 1], [], []>} : vector<8x16xf32>, vector<16x32xf32>, vector<8x32xf32> -> vector<8x32xf32>
    %c0_5 = arith.constant 0 : index
    %c0_6 = arith.constant 0 : index
    %4 = vector.load %arg4[%c0_5, %c0_6] : memref<1x32xf32, #tpu.memory_space<vmem>>, vector<1x32xf32>
    %5 = vector.broadcast %4 : vector<1x32xf32> to vector<8x32xf32>
    %6 = arith.addf %3, %5 : vector<8x32xf32>
    %cst_7 = arith.constant 0.000000e+00 : f32
    %7 = vector.broadcast %cst_7 : f32 to vector<8x32xf32>
    %8 = arith.maximumf %6, %7 : vector<8x32xf32>
    %c0_8 = arith.constant 0 : index
    %c0_9 = arith.constant 0 : index
    %9 = vector.load %arg5[%c0_8, %c0_9] : memref<32x128xf32, #tpu.memory_space<vmem>>, vector<32x128xf32>
    %cst_10 = arith.constant dense<0.000000e+00> : vector<8x128xf32>
    %10 = tpu.matmul %8, %9, %cst_10 {dimension_numbers = #tpu.dot_dimension_numbers<[1], [0], [0], [1], [0, 0, 1, 1], [], []>} : vector<8x32xf32>, vector<32x128xf32>, vector<8x128xf32> -> vector<8x128xf32>
    %c0_11 = arith.constant 0 : index
    %c0_12 = arith.constant 0 : index
    %11 = vector.load %arg6[%c0_11, %c0_12] : memref<1x128xf32, #tpu.memory_space<vmem>>, vector<1x128xf32>
    %12 = vector.broadcast %11 : vector<1x128xf32> to vector<8x128xf32>
    %13 = arith.addf %10, %12 : vector<8x128xf32>
    %14 = vector.extract_strided_slice %13 {offsets = [0, 0], sizes = [8, 32], strides = [1, 1]} : vector<8x128xf32> to vector<8x32xf32>
    %15 = vector.extract_strided_slice %13 {offsets = [0, 32], sizes = [8, 32], strides = [1, 1]} : vector<8x128xf32> to vector<8x32xf32>
    %16 = arith.mulf %15, %1 : vector<8x32xf32>
    %17 = arith.addf %16, %14 : vector<8x32xf32>
    %c0_13 = arith.constant 0 : index
    %c0_14 = arith.constant 0 : index
    %18 = vector.load %arg7[%c0_13, %c0_14] : memref<32x128xf32, #tpu.memory_space<vmem>>, vector<32x128xf32>
    %cst_15 = arith.constant dense<0.000000e+00> : vector<8x128xf32>
    %19 = tpu.matmul %17, %18, %cst_15 {dimension_numbers = #tpu.dot_dimension_numbers<[1], [0], [0], [1], [0, 0, 1, 1], [], []>} : vector<8x32xf32>, vector<32x128xf32>, vector<8x128xf32> -> vector<8x128xf32>
    %c0_16 = arith.constant 0 : index
    %c0_17 = arith.constant 0 : index
    %20 = vector.load %arg8[%c0_16, %c0_17] : memref<1x128xf32, #tpu.memory_space<vmem>>, vector<1x128xf32>
    %21 = vector.broadcast %20 : vector<1x128xf32> to vector<8x128xf32>
    %22 = arith.addf %19, %21 : vector<8x128xf32>
    %23 = arith.addf %13, %22 : vector<8x128xf32>
    %c0_18 = arith.constant 0 : index
    %c0_19 = arith.constant 0 : index
    %24 = vector.load %arg9[%c0_18, %c0_19] : memref<8x128xf32, #tpu.memory_space<vmem>>, vector<8x128xf32>
    tpu.vector_store %arg9[%c0_18, %c0_19], %23 {strides = array<i32>} : memref<8x128xf32, #tpu.memory_space<vmem>>, vector<8x128xf32>,
    return
  }
  func.func @transform_0(%arg0: i32) -> (i32, i32) {
    %c0_i32 = arith.constant 0 : i32
    %c0_i32_0 = arith.constant 0 : i32
    return %arg0, %c0_i32 : i32, i32
  }
  func.func @transform_1(%arg0: i32) -> (i32, i32) {
    %c0_i32 = arith.constant 0 : i32
    %c0_i32_0 = arith.constant 0 : i32
    return %arg0, %c0_i32 : i32, i32
  }
  func.func @transform_2(%arg0: i32) -> (i32, i32) {
    %c0_i32 = arith.constant 0 : i32
    %c0_i32_0 = arith.constant 0 : i32
    %c0_i32_1 = arith.constant 0 : i32
    return %c0_i32, %c0_i32_0 : i32, i32
  }
  func.func @transform_3(%arg0: i32) -> (i32, i32) {
    %c0_i32 = arith.constant 0 : i32
    %c0_i32_0 = arith.constant 0 : i32
    %c0_i32_1 = arith.constant 0 : i32
    return %c0_i32, %c0_i32_0 : i32, i32
  }
  func.func @transform_4(%arg0: i32) -> (i32, i32) {
    %c0_i32 = arith.constant 0 : i32
    %c0_i32_0 = arith.constant 0 : i32
    %c0_i32_1 = arith.constant 0 : i32
    return %c0_i32, %c0_i32_0 : i32, i32
  }
  func.func @transform_5(%arg0: i32) -> (i32, i32) {
    %c0_i32 = arith.constant 0 : i32
    %c0_i32_0 = arith.constant 0 : i32
    %c0_i32_1 = arith.constant 0 : i32
    return %c0_i32, %c0_i32_0 : i32, i32
  }
  func.func @transform_6(%arg0: i32) -> (i32, i32) {
    %c0_i32 = arith.constant 0 : i32
    %c0_i32_0 = arith.constant 0 : i32
    %c0_i32_1 = arith.constant 0 : i32
    return %c0_i32, %c0_i32_0 : i32, i32
  }
  func.func @transform_7(%arg0: i32) -> (i32, i32) {
    %c0_i32 = arith.constant 0 : i32
    %c0_i32_0 = arith.constant 0 : i32
    %c0_i32_1 = arith.constant 0 : i32
    return %c0_i32, %c0_i32_0 : i32, i32
  }
  func.func @transform_8(%arg0: i32) -> (i32, i32) {
    %c0_i32 = arith.constant 0 : i32
    %c0_i32_0 = arith.constant 0 : i32
    return %arg0, %c0_i32 : i32, i32
  }
}

</mosaic_0001>

<bundles_post_ra>
// kernel: tpu_custom_call.1
= control target key start
LH: loop header
LB: loop body
LE: loop exit
PB: predicated region body
PF: predicated region fallthrough
CT: control target
= control target key end

     0   :  { %13 = vsyncpa [#allocation3], 0  ;;  %s666_s0 = inlined_call_operand.hbm [shape: f32[8,16], index: 0, kind: input, shape index: {}]   ;;  %s667_s1 = inlined_call_operand.hbm [shape: f32[8,32], index: 1, kind: input, shape index: {}]   ;;  %s668_s2 = inlined_call_operand.hbm [shape: f32[16,32], index: 2, kind: input, shape index: {}]   ;;  %s669_s3 = inlined_call_operand.vmem [shape: f32[1,32], index: 3, kind: input, shape index: {}]   ;;  %s670_s4 = inlined_call_operand.hbm [shape: f32[32,128], index: 4, kind: input, shape index: {}]   ;;  %s671_s5 = inlined_call_operand.vmem [shape: f32[1,128], index: 5, kind: input, shape index: {}]   ;;  %s672_s6 = inlined_call_operand.hbm [shape: f32[32,128], index: 6, kind: input, shape index: {}]   ;;  %s673_s7 = inlined_call_operand.vmem [shape: f32[1,128], index: 7, kind: input, shape index: {}]   ;;  %s674_s8 = inlined_call_operand.hbm [shape: f32[8,128], index: 8, kind: output, shape index: {}]  }
   0x1   :  { %14 = vsyncpa [#allocation6], 0 }
   0x2   :  { %15 = vsyncpa [#allocation9], 0 }
   0x3   :  { %16 = vsyncpa [#allocation4], 0  ;;  %s568_s27 = smov [#allocation5]  }
   0x4   :  { %s33_s28 = sshll.u32 %s568_s27, 4  ;;  %s34_s28 = int_to_ptr.vmem [resolvable:$true] %s33_s28 }
   0x5   :  { %s448_s29 = scalar_lea.vmem %s34_s28, 128  ;;  %p453_p1 = scmp.lt.s32.totalorder %s34_s28, %s34_s28 }
   0x6   :  { %p449_p0 = scmp.ne.s32.totalorder %s34_s28, %s448_s29  ;;  %p454_p2 = scmp.lt.s32.totalorder %s448_s29, %s448_s29 }
   0x8   :  { %p455_p3 = por %p454_p2, %p453_p1 }
   0xa   :  { %p456_p4 = pnand %p455_p3, %p449_p0 }
   0xc   :  { %459 = shalt.err (!%p456_p4)
}
   0xd   :  { %36 = dma.hbm_to_vmem [thread:$0]  %s667_s1, 128, %s34_s28, [#allocation6]  }
   0xe   :  { %s569_s10 = smov [#allocation8]   ;;  %s570_s12 = smov [#allocation2]  }
   0xf   :  { %s56_s11 = sshll.u32 %s569_s10, 4  ;;  %s23_s13 = sshll.u32 %s570_s12, 4  ;;  %s57_s11 = int_to_ptr.vmem [resolvable:$true] %s56_s11  ;;  %s24_s13 = int_to_ptr.vmem [resolvable:$true] %s23_s13 }
  0x10   :  { %s468_s14 = scalar_lea.vmem %s57_s11, 512  ;;  %p473_p6 = scmp.lt.s32.totalorder %s57_s11, %s57_s11 }
  0x11   :  { %p469_p5 = scmp.ne.s32.totalorder %s57_s11, %s468_s14  ;;  %p474_p7 = scmp.lt.s32.totalorder %s468_s14, %s468_s14 }
  0x13   :  { %p475_p8 = por %p474_p7, %p473_p6 }
  0x15   :  { %p476_p9 = pnand %p475_p8, %p469_p5 }
  0x17   :  { %479 = shalt.err (!%p476_p9)
}
  0x18   :  { %s571_s15 = smov 128   ;;  %s572_s16 = smov 8  }
  0x19   :  { %62 = dma.hbm_to_vmem [thread:$0]  %s670_s4, 512, %s57_s11, [#allocation9], %s571_s15, %s571_s15, %s572_s16  }
  0x1a   :  { %s488_s1 = scalar_lea.vmem %s24_s13, 128  ;;  %p493_p11 = scmp.lt.s32.totalorder %s24_s13, %s24_s13 }
  0x1b   :  { %p489_p10 = scmp.ne.s32.totalorder %s24_s13, %s488_s1  ;;  %p494_p12 = scmp.lt.s32.totalorder %s488_s1, %s488_s1 }
  0x1d   :  { %p495_p13 = por %p494_p12, %p493_p11 }
  0x1f   :  { %p496_p0 = pnand %p495_p13, %p489_p10 }
  0x21   :  { %499 = shalt.err (!%p496_p0)
}
  0x22   :  { %26 = dma.hbm_to_vmem [thread:$0]  %s666_s0, 128, %s24_s13, [#allocation3]  }
  0x23   :  { %s573_s21 = smov [#allocation7]   ;;  %s574_s23 = smov [#allocation10]  }
  0x24   :  { %s42_s22 = sshll.u32 %s573_s21, 4  ;;  %s70_s24 = sshll.u32 %s574_s23, 4  ;;  %s43_s22 = int_to_ptr.vmem [resolvable:$true] %s42_s22  ;;  %s71_s24 = int_to_ptr.vmem [resolvable:$true] %s70_s24 }
  0x25   :  { %s508_s25 = scalar_lea.vmem %s43_s22, 256  ;;  %p513_p2 = scmp.lt.s32.totalorder %s43_s22, %s43_s22 }
  0x26   :  { %p509_p1 = scmp.ne.s32.totalorder %s43_s22, %s508_s25  ;;  %p514_p3 = scmp.lt.s32.totalorder %s508_s25, %s508_s25 }
  0x28   :  { %p515_p4 = por %p514_p3, %p513_p2 }
  0x2a   :  { %p516_p5 = pnand %p515_p4, %p509_p1 }
  0x2c   :  { %519 = shalt.err (!%p516_p5)
}
  0x2d   :  { %48 = dma.hbm_to_vmem [thread:$0]  %s668_s2, 256, %s43_s22, [#allocation6], %s571_s15, %s571_s15, %s572_s16  }
  0x2e   :  { %s528_s0 = scalar_lea.vmem %s71_s24, 512  ;;  %p533_p7 = scmp.lt.s32.totalorder %s71_s24, %s71_s24 }
  0x2f   :  { %p529_p6 = scmp.ne.s32.totalorder %s71_s24, %s528_s0  ;;  %p534_p8 = scmp.lt.s32.totalorder %s528_s0, %s528_s0 }
  0x31   :  { %p535_p9 = por %p534_p8, %p533_p7 }
  0x33   :  { %p536_p10 = pnand %p535_p9, %p529_p6 }
  0x35   :  { %539 = shalt.err (!%p536_p10)
}
  0x36   :  { %76 = dma.hbm_to_vmem [thread:$0]  %s672_s6, 512, %s71_s24, [#allocation9], %s571_s15, %s571_s15, %s572_s16  }
  0x37   :  { %560 = dma.done.wait [#allocation3], 128  }
  0x38   :  { %561 = vsyncadd [#allocation3], 4294967168 }
  0x39   :  { %562 = dma.done.wait [#allocation6], 384  }
  0x3a   :  { %563 = vsyncadd [#allocation6], 4294966912 }
  0x3b   :  { %564 = dma.done.wait [#allocation9], 1024  }
  0x3c   :  { %565 = vsyncadd [#allocation9], 4294966272  ;;  %v575_v0 = vmov 0.0   ;;  %vm576_vm0 = vmmov 0   ;;  %v97_v1 = vld [vmem:[#allocation7 + $0x8] sm:$0xff]  ;;  %v96_v2 = vld [vmem:[#allocation7] sm:$0xff] }
  0x3d   :  { %399 = vmatprep.subr.mxu0 %v575_v0  ;;  %403 = vmatprep.mubr.msk.f32.mxu0 %vm576_vm0, %v575_v0  ;;  %v94_v3 = vld [vmem:[#allocation2] sm:$0xff]  ;;  %vm105_vm1 = vcmask 130048   ;;  %v183_v4 = vld [vmem:[#allocation8 + $0x18] sm:$0xff]  ;;  %v182_v5 = vld [vmem:[#allocation8 + $0x10] sm:$0xff]  ;;  %s577_s2 = smov 32   ;;  %vm191_vm2 = vcmask 261120  }
  0x3e   :  { %406 = vmatprep.subr.mxu1 %v575_v0  ;;  %414 = vmatprep.mubr.msk.f32.mxu1 %vm576_vm0, %v575_v0  ;;  %v181_v6 = vld [vmem:[#allocation8 + $0x8] sm:$0xff]  ;;  %v180_v7 = vld [vmem:[#allocation8] sm:$0xff]  ;;  %v278_v14 = vld [vmem:[#allocation10 + $0x18] sm:$0xff] }
  0x3f   :  { %400 = vmatpush3.msra.mxu0 %v97_v1  ;;  %407 = vmatpush3.msra.mxu1 %v183_v4  ;;  %v95_v8 = vld [vmem:[#allocation5] sm:$0xff]  ;;  %v380_v9 = vld [vmem:[%s669_s3] ss:$0 sm:$0xff]  ;;  %v277_v15 = vld [vmem:[#allocation10 + $0x10] sm:$0xff]  ;;  %s578_s3 = smov 96  }
  0x40   :  { %401 = vmatprep.subr.mxu0 %v575_v0  ;;  %408 = vmatprep.subr.mxu1 %v575_v0  ;;  %v276_v16 = vld [vmem:[#allocation10 + $0x8] sm:$0xff]  ;;  %v275_v17 = vld [vmem:[#allocation10] sm:$0xff] }
  0x41   :  { %402 = vmatpush3.msra.mxu0 %v96_v2  ;;  %409 = vmatpush3.msra.mxu1 %v182_v5  ;;  %v382_v18 = vld [vmem:[%s671_s5] ss:$0 sm:$0xff]  ;;  %s579_s5 = smov [#allocation11]  }
  0x42   :  { %404 = vmatmul.mubr.msk.f32.vlgmr.msra.gmra.mxu0 %vm105_vm1, %v94_v3  ;;  %417 = vmatprep.subr.mxu0 %v575_v0  ;;  %v384_v27 = vld [vmem:[%s673_s7] ss:$0 sm:$0xff]  ;;  %s369_s12 = sshll.u32 %s579_s5, 4  ;;  %s370_s12 = int_to_ptr.vmem [resolvable:$true] %s369_s12 }
  0x43   :  { %425 = vmatprep.mubr.msk.f32.mxu0 %vm576_vm0, %v575_v0  ;;  %410 = vmatprep.subr.mxu1 %v575_v0  ;;  %s540_s13 = scalar_lea.vmem %s370_s12, 128  ;;  %p545_p12 = scmp.lt.s32.totalorder %s370_s12, %s370_s12 }
  0x44   :  { %411 = vmatpush3.msra.mxu1 %v181_v6  ;;  %266 = vrot.lane.b32.xlu0 %v95_v8, %s577_s2  ;;  %p541_p11 = scmp.ne.s32.totalorder %s370_s12, %s540_s13  ;;  %p546_p13 = scmp.lt.s32.totalorder %s540_s13, %s540_s13 }
  0x45   :  { %412 = vmatprep.subr.mxu1 %v575_v0  ;;  %418 = vmatpush3.msra.mxu0 %v278_v14 }
  0x46   :  { %413 = vmatpush3.msra.mxu1 %v180_v7  ;;  %419 = vmatprep.subr.mxu0 %v575_v0  ;;  %p547_p0 = por %p546_p13, %p545_p12 }
  0x47   :  { %420 = vmatpush3.msra.mxu0 %v277_v15 }
  0x48   :  { %421 = vmatprep.subr.mxu0 %v575_v0  ;;  %p548_p1 = pnand %p547_p0, %p541_p11 }
  0x49   :  { %422 = vmatpush3.msra.mxu0 %v276_v16 }
  0x4a   :  { %423 = vmatprep.subr.mxu0 %v575_v0 }
  0x4b   :  { %424 = vmatpush3.msra.mxu0 %v275_v17 }
  0xb6   :  { %v267_v22 = vpop.permute.xlu0 %266 }
 0x102   :  { %v175_v10 = vpop.f32.mrf.mxu0 }
 0x103   :  { %v176_v11 = vadd.f32 %v380_v9, %v175_v10 }
 0x104   :  { %v405_v12 = vpop.f32.mrf.mxu0 }
 0x105   :  { %v179_v13 = vmax.f32 %v176_v11, 0.0 }
 0x107   :  { %415 = vmatmul.mubr.msk.f32.vlgmr.msra.gmra.mxu1 %vm191_vm2, %v179_v13 }
 0x1c7   :  { %v261_v19 = vpop.f32.mrf.mxu1 }
 0x1c8   :  { %v262_v20 = vadd.f32 %v382_v18, %v261_v19 }
 0x1c9   :  { %v416_v21 = vpop.f32.mrf.mxu1 }
 0x1ca   :  { %271 = vrot.lane.b32.xlu0 %v262_v20, %s577_s2  ;;  %v269_v23 = vmul.f32 %v267_v22, %v262_v20 }
 0x23c   :  { %v272_v24 = vpop.permute.xlu0 %271 }
 0x23d   :  { %v274_v25 = vadd.f32 %v272_v24, %v269_v23 }
 0x23f   :  { %287 = vrot.lane.b32.xlu1 %v274_v25, %s578_s3 }
 0x2b1   :  { %v288_v26 = vpop.permute.xlu1 %287 }
 0x2b2   :  { %426 = vmatmul.mubr.msk.f32.vlgmr.msra.gmra.mxu0 %vm191_vm2, %v288_v26 }
 0x372   :  { %v357_v28 = vpop.f32.mrf.mxu0 }
 0x373   :  { %v358_v29 = vadd.f32 %v384_v27, %v357_v28 }
 0x374   :  { %v427_v30 = vpop.f32.mrf.mxu0 }
 0x375   :  { %v361_v31 = vadd.f32 %v358_v29, %v262_v20 }
 0x377   :  { %362 = vst [vmem:[#allocation11] sm:$0xff] %v361_v31 }
 0x378   :  { %551 = shalt.err (!%p548_p1)
}
 0x379   :  { %372 = dma.vmem_to_hbm [thread:$0]  %s370_s12, 128, %s674_s8, [#allocation4]  }
 0x37a   :  { %566 = dma.done.wait [#allocation4], 128  }
 0x37b   :  { %567 = vsyncadd [#allocation4], 4294967168 }
 0x37c   :  { %376 = vsyncpa [#allocation3], 1 }
 0x37d   :  { %377 = vsyncpa [#allocation6], 1 }
 0x37e   :  { %378 = vsyncpa [#allocation9], 1 }
 0x37f   :  { %379 = vsyncpa [#allocation4], 1 }

</bundles_post_ra>
